<compile_context>
chip_gen: v7x
topology: tpu7x:2x2x1
jax: 0.10.0
libtpu: 0.0.40
codegen_flags: <defaults>
</compile_context>

<pallas_src>
import jax
import jax.numpy as jnp
from jax.experimental import pallas as pl
from jax.experimental.pallas import tpu as pltpu


# ------------------------------- kernels ----------------------------------

def _bio_compute(params, diff, prev_m, prev_s):
    """Shared elementwise body. `params` is the packed (3, tile_f) f32 block."""
    f32 = jnp.float32
    nt = params[0:1, :]          # neurotransmitters
    thr = params[1:2, :]         # action threshold
    leak_gate = params[2:3, :]   # precomputed sigmoid(leak)

    membrane = prev_m.astype(f32) * (1.0 - prev_s.astype(f32))
    membrane = membrane * leak_gate
    membrane = membrane + diff.astype(f32)

    spike_proba = jax.nn.sigmoid(membrane + thr)
    # round(p) == 1 iff p > 0.5 (round-half-even gives 0 at the exact 0.5 tie),
    # so this compare matches torch.round(sigmoid(.)) exactly. The forward value
    # of the straight-through estimator is the hard spike.
    spike = jnp.where(spike_proba > 0.5, 1.0, 0.0)
    # TODO(synk): sample=True (Bernoulli via pltpu.prng_seed/prng_random_bits)
    # not implemented; this kernel covers the deterministic (round) forward.
    return nt * spike, membrane, spike


def bio_cell_kernel(params_ref, diff_ref, prev_m_ref, prev_s_ref,
                    out_ref, mem_ref, spike_ref):
    out, mem, spike = _bio_compute(params_ref[...], diff_ref[...],
                                   prev_m_ref[...], prev_s_ref[...])
    out_ref[...] = out.astype(out_ref.dtype)
    mem_ref[...] = mem.astype(mem_ref.dtype)
    spike_ref[...] = spike.astype(spike_ref.dtype)


def bio_cell_kernel_state_only(params_ref, diff_ref, prev_m_ref, prev_s_ref,
                               mem_ref, spike_ref):
    _, mem, spike = _bio_compute(params_ref[...], diff_ref[...],
                                 prev_m_ref[...], prev_s_ref[...])
    mem_ref[...] = mem.astype(mem_ref.dtype)
    spike_ref[...] = spike.astype(spike_ref.dtype)


# ------------------------------ tile picking -------------------------------

# Per (tile_b, tile_f) array, per pipeline buffer. 6 data streams x 2 buffers
# x 2 MiB = 24 MiB VMEM worst case -> safe under v7x's 64 MiB physical VMEM,
# and large enough per grid step to amortize the ~0.35 us step overhead.
_MAX_TILE_BYTES = 2 * 1024 * 1024


def _round_up(x, m):
    return ((x + m - 1) // m) * m


def _sublane(itemsize):
    # Rows per packed vreg: f32 -> 8, bf16 -> 16, int8/fp8 -> 32.
    return max(8, 32 // int(itemsize))


def _pick_tiles(B, F_pad, itemsize):
    """Pick large, (8,128)-legal, lane-dense tiles against the VMEM budget."""
    sub = _sublane(itemsize)

    # Feature tile: largest multiple-of-128 divisor of F_pad, capped at 2048,
    # so every store is an unmasked dense vst (no partial edge blocks).
    n128 = F_pad // 128
    tile_f = 128
    for cand in range(min(16, n128), 0, -1):
        if n128 % cand == 0:
            tile_f = cand * 128
            break

    # Batch tile: fill the per-buffer byte budget; multiple of `sub`.
    budget_b = max(sub, (_MAX_TILE_BYTES // (tile_f * itemsize)) // sub * sub)
    tile_b = B if B <= budget_b else budget_b

    steps_b = pl.cdiv(B, tile_b)
    steps_f = pl.cdiv(F_pad, tile_f)
    if steps_b * steps_f == 1:
        # v7x megacore: keep >= 2 grid steps when there is enough work.
        if B >= 2 * sub:
            tile_b = _round_up(pl.cdiv(B, 2), sub)
        elif tile_f % 256 == 0:
            tile_f //= 2
    elif steps_b > 1 and steps_b % 2 == 1:
        # Prefer an even number of batch steps so both v7x TensorCores balance.
        for cand in (_round_up(pl.cdiv(B, steps_b + 1), sub), tile_b - sub):
            if sub <= cand <= budget_b and pl.cdiv(B, cand) % 2 == 0:
                tile_b = cand
                break
    return tile_b, tile_f


# -------------------------------- wrapper ----------------------------------

def bio_cell(diff, prev_membrane, prev_spike,
             neurotransmitters, action_threshold, leak,
             *, tile_b=None, tile_f=None, emit_output=True,
             donate_state=False):
    """BioCell forward. Returns (output, membrane, spike), or (membrane, spike)
    when emit_output=False (output == neurotransmitters * spike is derivable)."""
    B, F = diff.shape
    dt = diff.dtype
    itemsize = jnp.dtype(dt).itemsize
    f32 = jnp.float32

    # Parameters: sigmoid(leak) hoisted (f32) and packed with nt / thr into a
    # single (3, F) block -> one constant-index DMA stream per feature tile.
    params = jnp.stack([neurotransmitters.astype(f32),
                        action_threshold.astype(f32),
                        jax.nn.sigmoid(leak.astype(f32))], axis=0)

    # Pad features to a multiple of 128 for lane-dense, unmasked stores.
    F_pad = _round_up(F, 128)
    if F_pad != F:
        pad = ((0, 0), (0, F_pad - F))
        params = jnp.pad(params, pad)
        diff = jnp.pad(diff, pad)
        prev_membrane = jnp.pad(prev_membrane, pad)
        prev_spike = jnp.pad(prev_spike, pad)

    prev_membrane = prev_membrane.astype(dt)
    prev_spike = prev_spike.astype(dt)

    auto_b, auto_f = _pick_tiles(B, F_pad, itemsize)
    tile_b = auto_b if tile_b is None else tile_b
    tile_f = auto_f if tile_f is None else tile_f

    # Feature axis first (slow) so the (3, tile_f) param block keeps a constant
    # block index across consecutive batch steps -> fetched once per fj.
    grid = (pl.cdiv(F_pad, tile_f), pl.cdiv(B, tile_b))
    param_spec = pl.BlockSpec((3, tile_f), lambda fj, bi: (0, fj))
    data_spec = pl.BlockSpec((tile_b, tile_f), lambda fj, bi: (bi, fj))

    n_out = 3 if emit_output else 2
    out_shape = tuple(jax.ShapeDtypeStruct((B, F_pad), dt) for _ in range(n_out))
    out_specs = tuple(data_spec for _ in range(n_out))

    # (3 data inputs + n_out outputs) double-buffered + padded param block.
    vmem_bytes = (2 * (3 + n_out) * tile_b * tile_f * itemsize
                  + 2 * 8 * tile_f * 4)
    vmem_limit = int(min(max(vmem_bytes + (4 << 20), 32 << 20), 48 << 20))

    aliases = {}
    if donate_state:
        # prev_membrane -> membrane output, prev_spike -> spike output:
        # in-place recurrent state update (caller should donate those buffers).
        aliases = {2: n_out - 2, 3: n_out - 1}

    kernel = bio_cell_kernel if emit_output else bio_cell_kernel_state_only

    results = pl.pallas_call(
        kernel,
        grid=grid,
        in_specs=[param_spec, data_spec, data_spec, data_spec],
        out_specs=out_specs,
        out_shape=out_shape,
        input_output_aliases=aliases,
        compiler_params=pltpu.CompilerParams(
            dimension_semantics=("parallel", "parallel"),
            vmem_limit_bytes=vmem_limit),
    )(params, diff, prev_membrane, prev_spike)

    if F_pad != F:
        results = tuple(r[:, :F] for r in results)
    return results


# ------------------------------- reference ---------------------------------

def bio_cell_ref(diff, prev_membrane, prev_spike, nt, thr, leak):
    """Pure-JAX reference mirroring the PyTorch forward (round(sigmoid))."""
    membrane = prev_membrane * (1.0 - prev_spike)
    membrane = membrane * jax.nn.sigmoid(leak[None, :])
    membrane = membrane + diff
    spike_proba = jax.nn.sigmoid(membrane + thr[None, :])
    spike = jnp.round(spike_proba)
    output = nt[None, :] * spike
    return output, membrane, spike


# --------------------------------- main -------------------------------------

if __name__ == "__main__":
    def make_inputs(key, B, F, dtype):
        k_diff, k_pm, k_ps, k_nt, k_thr, k_leak = jax.random.split(key, 6)
        diff = jax.random.normal(k_diff, (B, F), dtype=jnp.float32)
        prev_m = jax.random.normal(k_pm, (B, F), dtype=jnp.float32)
        prev_s = (jax.random.uniform(k_ps, (B, F)) > 0.5).astype(jnp.float32)
        # Deterministic parameter init (torch.Tensor(out_features) is
        # uninitialized; we use PRNG-derived values).
        nt = jax.random.normal(k_nt, (F,), dtype=jnp.float32)
        thr = 0.1 * jax.random.normal(k_thr, (F,), dtype=jnp.float32)
        leak = jax.random.normal(k_leak, (F,), dtype=jnp.float32)
        return (diff.astype(dtype), prev_m.astype(dtype), prev_s.astype(dtype),
                nt, thr, leak)

    # Case 1: f32, 128-aligned features — exact match vs. reference.
    B, F = 8, 256
    diff, pm, ps, nt, thr, leak = make_inputs(jax.random.PRNGKey(0), B, F, jnp.float32)
    out, mem, spk = bio_cell(diff, pm, ps, nt, thr, leak)
    jax.block_until_ready((out, mem, spk))
    r_out, r_mem, r_spk = bio_cell_ref(diff, pm, ps, nt, thr, leak)
    assert jnp.allclose(mem, r_mem, atol=1e-5, rtol=1e-5)
    assert bool(jnp.all(spk == r_spk))
    assert jnp.allclose(out, r_out, atol=1e-5, rtol=1e-5)

    # Case 1b: state-only outputs (drops redundant nt*spike writeback) with
    # input_output_aliases wired for in-place recurrent state updates.
    mem2, spk2 = bio_cell(diff, pm + 0.0, ps + 0.0, nt, thr, leak,
                          emit_output=False, donate_state=True)
    jax.block_until_ready((mem2, spk2))
    assert jnp.allclose(mem2, r_mem, atol=1e-5, rtol=1e-5)
    assert bool(jnp.all(spk2 == r_spk))

    # Case 2: non-128-multiple feature dim exercises the pad/slice path.
    B2, F2 = 4, 200
    diff2, pm2, ps2, nt2, thr2, leak2 = make_inputs(jax.random.PRNGKey(1), B2, F2, jnp.float32)
    out2, mem_c2, spk_c2 = bio_cell(diff2, pm2, ps2, nt2, thr2, leak2)
    jax.block_until_ready((out2, mem_c2, spk_c2))
    ro2, rm2, rs2 = bio_cell_ref(diff2, pm2, ps2, nt2, thr2, leak2)
    assert out2.shape == (B2, F2)
    assert jnp.allclose(mem_c2, rm2, atol=1e-5, rtol=1e-5)
    assert bool(jnp.all(spk_c2 == rs2))
    assert jnp.allclose(out2, ro2, atol=1e-5, rtol=1e-5)

    # Case 3: bf16 I/O smoke test (halved HBM bytes; compute stays f32 in-kernel).
    diff3, pm3, ps3, nt3, thr3, leak3 = make_inputs(jax.random.PRNGKey(2), 8, 256, jnp.bfloat16)
    out3, mem3, spk3 = bio_cell(diff3, pm3, ps3, nt3, thr3, leak3)
    jax.block_until_ready((out3, mem3, spk3))
    assert out3.dtype == jnp.bfloat16 and mem3.dtype == jnp.bfloat16
    _, rm3, _ = bio_cell_ref(diff3.astype(jnp.float32), pm3.astype(jnp.float32),
                             ps3.astype(jnp.float32), nt3, thr3, leak3)
    assert jnp.allclose(mem3.astype(jnp.float32), rm3, atol=3e-2, rtol=3e-2)

    print("KERNEL_OK")
</pallas_src>

<mosaic_0001>
module attributes {stable_mosaic.version = 11 : i64} {
  func.func @bio_cell_kernel(%arg0: i32, %arg1: i32, %arg2: memref<3x128xf32, #tpu.memory_space<vmem>>, %arg3: memref<8x128xf32, #tpu.memory_space<vmem>>, %arg4: memref<8x128xf32, #tpu.memory_space<vmem>>, %arg5: memref<8x128xf32, #tpu.memory_space<vmem>>, %arg6: memref<8x128xf32, #tpu.memory_space<vmem>>, %arg7: memref<8x128xf32, #tpu.memory_space<vmem>>, %arg8: memref<8x128xf32, #tpu.memory_space<vmem>>) attributes {dimension_semantics = [#tpu.dimension_semantics<parallel>, #tpu.dimension_semantics<parallel>], iteration_bounds = array<i64: 2, 1>, scalar_prefetch = 0 : i64, scratch_operands = 0 : i64, tpu.core_type = #tpu.core_type<tc>, window_params = [{transform_indices = @transform_0, window_bounds = array<i64: 3, 128>}, {transform_indices = @transform_1, window_bounds = array<i64: 8, 128>}, {transform_indices = @transform_2, window_bounds = array<i64: 8, 128>}, {transform_indices = @transform_3, window_bounds = array<i64: 8, 128>}, {transform_indices = @transform_4, window_bounds = array<i64: 8, 128>}, {transform_indices = @transform_5, window_bounds = array<i64: 8, 128>}, {transform_indices = @transform_6, window_bounds = array<i64: 8, 128>}]} {
    %c0 = arith.constant 0 : index
    %c0_0 = arith.constant 0 : index
    %0 = vector.load %arg2[%c0, %c0_0] : memref<3x128xf32, #tpu.memory_space<vmem>>, vector<3x128xf32>
    %c0_1 = arith.constant 0 : index
    %c0_2 = arith.constant 0 : index
    %1 = vector.load %arg3[%c0_1, %c0_2] : memref<8x128xf32, #tpu.memory_space<vmem>>, vector<8x128xf32>
    %c0_3 = arith.constant 0 : index
    %c0_4 = arith.constant 0 : index
    %2 = vector.load %arg4[%c0_3, %c0_4] : memref<8x128xf32, #tpu.memory_space<vmem>>, vector<8x128xf32>
    %c0_5 = arith.constant 0 : index
    %c0_6 = arith.constant 0 : index
    %3 = vector.load %arg5[%c0_5, %c0_6] : memref<8x128xf32, #tpu.memory_space<vmem>>, vector<8x128xf32>
    %4 = vector.extract_strided_slice %0 {offsets = [0, 0], sizes = [1, 128], strides = [1, 1]} : vector<3x128xf32> to vector<1x128xf32>
    %5 = vector.extract_strided_slice %0 {offsets = [1, 0], sizes = [1, 128], strides = [1, 1]} : vector<3x128xf32> to vector<1x128xf32>
    %6 = vector.extract_strided_slice %0 {offsets = [2, 0], sizes = [1, 128], strides = [1, 1]} : vector<3x128xf32> to vector<1x128xf32>
    %cst = arith.constant 1.000000e+00 : f32
    %7 = vector.broadcast %cst : f32 to vector<8x128xf32>
    %8 = arith.subf %7, %3 : vector<8x128xf32>
    %9 = arith.mulf %2, %8 : vector<8x128xf32>
    %10 = vector.broadcast %6 : vector<1x128xf32> to vector<8x128xf32>
    %11 = arith.mulf %9, %10 : vector<8x128xf32>
    %12 = arith.addf %11, %1 : vector<8x128xf32>
    %13 = vector.broadcast %5 : vector<1x128xf32> to vector<8x128xf32>
    %14 = arith.addf %12, %13 : vector<8x128xf32>
    %15 = arith.negf %14 : vector<8x128xf32>
    %16 = math.exp %15 : vector<8x128xf32>
    %cst_7 = arith.constant 1.000000e+00 : f32
    %17 = vector.broadcast %cst_7 : f32 to vector<8x128xf32>
    %18 = arith.addf %17, %16 : vector<8x128xf32>
    %19 = arith.divf %17, %18 : vector<8x128xf32>
    %cst_8 = arith.constant 5.000000e-01 : f32
    %20 = vector.broadcast %cst_8 : f32 to vector<8x128xf32>
    %21 = arith.cmpf ogt, %19, %20 : vector<8x128xf32>
    %cst_9 = arith.constant 1.000000e+00 : f32
    %cst_10 = arith.constant 0.000000e+00 : f32
    %22 = vector.broadcast %cst_9 : f32 to vector<8x128xf32>
    %23 = vector.broadcast %cst_10 : f32 to vector<8x128xf32>
    %24 = arith.select %21, %22, %23 : vector<8x128xi1>, vector<8x128xf32>
    %25 = vector.broadcast %4 : vector<1x128xf32> to vector<8x128xf32>
    %26 = arith.mulf %25, %24 : vector<8x128xf32>
    %c0_11 = arith.constant 0 : index
    %c0_12 = arith.constant 0 : index
    %27 = vector.load %arg6[%c0_11, %c0_12] : memref<8x128xf32, #tpu.memory_space<vmem>>, vector<8x128xf32>
    tpu.vector_store %arg6[%c0_11, %c0_12], %26 {strides = array<i32>} : memref<8x128xf32, #tpu.memory_space<vmem>>, vector<8x128xf32>,
    %c0_13 = arith.constant 0 : index
    %c0_14 = arith.constant 0 : index
    %28 = vector.load %arg7[%c0_13, %c0_14] : memref<8x128xf32, #tpu.memory_space<vmem>>, vector<8x128xf32>
    tpu.vector_store %arg7[%c0_13, %c0_14], %12 {strides = array<i32>} : memref<8x128xf32, #tpu.memory_space<vmem>>, vector<8x128xf32>,
    %c0_15 = arith.constant 0 : index
    %c0_16 = arith.constant 0 : index
    %29 = vector.load %arg8[%c0_15, %c0_16] : memref<8x128xf32, #tpu.memory_space<vmem>>, vector<8x128xf32>
    tpu.vector_store %arg8[%c0_15, %c0_16], %24 {strides = array<i32>} : memref<8x128xf32, #tpu.memory_space<vmem>>, vector<8x128xf32>,
    return
  }
  func.func @transform_0(%arg0: i32, %arg1: i32) -> (i32, i32) {
    %c0_i32 = arith.constant 0 : i32
    %c0_i32_0 = arith.constant 0 : i32
    return %c0_i32, %arg0 : i32, i32
  }
  func.func @transform_1(%arg0: i32, %arg1: i32) -> (i32, i32) {
    %c0_i32 = arith.constant 0 : i32
    return %arg1, %arg0 : i32, i32
  }
  func.func @transform_2(%arg0: i32, %arg1: i32) -> (i32, i32) {
    %c0_i32 = arith.constant 0 : i32
    return %arg1, %arg0 : i32, i32
  }
  func.func @transform_3(%arg0: i32, %arg1: i32) -> (i32, i32) {
    %c0_i32 = arith.constant 0 : i32
    return %arg1, %arg0 : i32, i32
  }
  func.func @transform_4(%arg0: i32, %arg1: i32) -> (i32, i32) {
    %c0_i32 = arith.constant 0 : i32
    return %arg1, %arg0 : i32, i32
  }
  func.func @transform_5(%arg0: i32, %arg1: i32) -> (i32, i32) {
    %c0_i32 = arith.constant 0 : i32
    return %arg1, %arg0 : i32, i32
  }
  func.func @transform_6(%arg0: i32, %arg1: i32) -> (i32, i32) {
    %c0_i32 = arith.constant 0 : i32
    return %arg1, %arg0 : i32, i32
  }
}

</mosaic_0001>

<bundles_post_ra>
// kernel: tpu_custom_call.1
= control target key start
LH: loop header
LB: loop body
LE: loop exit
PB: predicated region body
PF: predicated region fallthrough
CT: control target
= control target key end

     0   :  { %s1539_s0 = inlined_call_operand.hbm [shape: f32[3,256], index: 0, kind: input, shape index: {}]   ;;  %s1540_s1 = inlined_call_operand.hbm [shape: f32[8,256], index: 1, kind: input, shape index: {}]   ;;  %s1541_s2 = inlined_call_operand.hbm [shape: f32[8,256], index: 2, kind: input, shape index: {}]   ;;  %s1542_s3 = inlined_call_operand.hbm [shape: f32[8,256], index: 3, kind: input, shape index: {}]   ;;  %s1543_s4 = inlined_call_operand.hbm [shape: f32[8,256], index: 4, kind: output, shape index: {0}]   ;;  %s1544_s5 = inlined_call_operand.hbm [shape: f32[8,256], index: 5, kind: output, shape index: {1}]   ;;  %s1545_s6 = inlined_call_operand.hbm [shape: f32[8,256], index: 6, kind: output, shape index: {2}]  }
   0x1   :  { %1558 = sst [smem:[#allocation26_spill]] %s1540_s1 }
   0x2   :  { %12 = vsyncpa [#allocation3], 0 }
   0x3   :  { %14 = vsyncpa [#allocation3 + $0x1], 0 }
   0x4   :  { %15 = vsyncpa [#allocation6], 0 }
   0x5   :  { %17 = vsyncpa [#allocation6 + $0x1], 0 }
   0x6   :  { %18 = vsyncpa [#allocation9], 0 }
   0x7   :  { %20 = vsyncpa [#allocation9 + $0x1], 0 }
   0x8   :  { %21 = vsyncpa [#allocation4], 0 }
   0x9   :  { %23 = vsyncpa [#allocation4 + $0x1], 0 }
   0xa   :  { %24 = vsyncpa [#allocation12], 0 }
   0xb   :  { %26 = vsyncpa [#allocation12 + $0x1], 0  ;;  %s1165_s21 = smov 0   ;;  %s1167_s22 = smov 0  }
   0xc   :  { %s1169_s23 = smov 0   ;;  %s1171_s24 = smov 0  }
   0xd   :  { %s1173_s25 = smov 0   ;;  %s1175_s26 = smov 0  }
   0xe LB: > { %1559 = sst [smem:[#allocation19_spill]] %s1100_s21  ;;  %s1196_s27 = sadd.s32 4294967295, %s1120_s26   ;;  %s1120_s26 = sphi %s1175_s26, %s32_s26   ;;  %s1116_s25 = sphi %s1173_s25, %s1590_s25   ;;  %s1112_s24 = sphi %s1171_s24, %s1589_s24   ;;  %s1108_s23 = sphi %s1169_s23, %s1588_s23   ;;  %s1104_s22 = sphi %s1167_s22, %s1592_s22   ;;  %s1100_s21 = sphi %s1165_s21, %s1591_s21  }
   0xf   : > { %1560 = sst [smem:[#allocation20_spill]] %s1108_s23  ;;  %s1546_s28 = sadd.s32 4294967294, %s1120_s26  }
  0x10   : > { %1561 = sst [smem:[#allocation21_spill]] %s1116_s25  ;;  %s44_s29 = sadd.s32 1, %s1116_s25 }
  0x11   : > { %1562 = sst [smem:[#allocation22_spill]] %s1120_s26  ;;  %s51_s30 = sadd.s32 1, %s1108_s23 }
  0x12   : > { %p46_p0 = scmp.ge.s32.totalorder %s44_s29, 2  ;;  %p58_p1 = scmp.ne.s32.totalorder %s1108_s23, %s1104_s22 }
  0x13   : > { %p59_p2 = scmp.eq.s32.totalorder %s1120_s26, 0  ;;  %p64_p3 = scmp.ne.s32.totalorder %s1104_s22, %s1100_s21 }
  0x14   : > { %s1594_s29 = smov (%p46_p0, %s44_s29), 0  ;;  %p65_p5 = scmp.eq.s32.totalorder %s1196_s27, 0 }
  0x15   : > { %1563 = sst [smem:[#allocation23_spill]] %s1594_s29  ;;  %p1208_p4 = por %p59_p2, %p58_p1 }
  0x16   : > { %s48_s8 = ssub.s32 %s1116_s25, %s1594_s29  ;;  %p174_p6 = scmp.eq.s32.totalorder %s1196_s27, 1 }
  0x17   : > { %p49_p7 = scmp.eq.s32.totalorder %s48_s8, 0  ;;  %p1216_p8 = por %p65_p5, %p64_p3 }
  0x18   : > { %p1220_p9 = por %p174_p6, %p58_p1  ;;  %p180_p10 = scmp.eq.s32.totalorder %s1546_s28, 1 }
  0x19   : > { %s1565_s9 = scalar_select %p1216_p8, 1, 0 }
  0x1a   : > { %s1566_s10 = scalar_select %p1220_p9, 1, 0 }
  0x1b   : > { %s1227_s11 = scalar_select %p49_p7, %s1108_s23, %s51_s30  }
  0x1c   : > { %p1229_p11 = por %p180_p10, %p64_p3  ;;  %p795_p13 = scmp.lt.s32.totalorder %s1120_s26, 2 }
  0x1d   : > { %1567 = sst [smem:[#allocation24_spill]] %s1227_s11  ;;  %s1236_s13 = sand.u32 1, %s1108_s23  }
  0x1e   : > { %s1568_s12 = scalar_select %p1229_p11, 1, 0 }
  0x1f   : > { %s274_s14 = sand.u32 1, %s1120_s26   ;;  %s1240_s15 = sshll.u32 %s1236_s13, 3 }
  0x20   : > { %1569 = sst [smem:[#allocation25_spill]] %s1568_s12  ;;  %p1244_p0 = pnand %p795_p13, %p1208_p4 }
  0x21   : > { %s1249_s17 = sshll.u32 %s1116_s25, 7  ;;  %s1571_s1 = sld [smem:[#allocation26_spill]] }
  0x22   : > { %s1570_s16 = scalar_select %p1244_p0, 1, 0 }
  0x23   : > { %s278_s30 = scalar_lea.vmem [#allocation5], %s1240_s15  ;;  %s1262_s8 = scalar_lea.sflag [#allocation6], %s274_s14 }
  0x24   : > { %s287_s7 = sshll.u32 %s278_s30, 4  ;;  %p1268_p4 = pneg %p1244_p0  ;;  %s1259_s7 = int_to_ptr.vmem [resolvable:$true] %s287_s7 }
  0x27   : > { %s1255_s20 = scalar_lea.hbm %s1571_s1, %s1249_s17  ;;  %s855_s30 = scalar_lea.hbm %s1571_s1, 256 }
  0x28   : > { %s850_s28 = scalar_lea.hbm %s1255_s20, 128  ;;  %p856_p7 = scmp.lt.u32.totalorder %s1255_s20, %s1571_s1 }
  0x29   : > { %p851_p3 = scmp.ne.s32.totalorder %s1255_s20, %s850_s28  ;;  %p857_p10 = scmp.lt.u32.totalorder %s855_s30, %s850_s28 }
  0x2a   : > { %p859_p12 = scmp.lt.u32.totalorder %s850_s28, %s1255_s20 }
  0x2b   : > { %p853_p5 = pnand %p1268_p4, %p851_p3  ;;  %p858_p13 = por %p857_p10, %p856_p7 }
  0x2d   : > { %p854_p6 = pneg %p853_p5  ;;  %p860_p1 = por %p859_p12, %p858_p13 }
  0x2f   : > { %p861_p2 = pnand %p860_p1, %p854_p6 }
  0x31   : > { %864 = shalt.err (!%p861_p2)
}
  0x32   : > { %s865_s14 = scalar_lea.vmem %s1259_s7, 128  ;;  %s1122_s18 = smov [#allocation5]  }
  0x33   : > { %p866_p3 = scmp.ne.s32.totalorder %s1259_s7, %s865_s14  ;;  %s870_s19 = sshll.u32 %s1122_s18, 4  ;;  %s871_s19 = int_to_ptr.vmem [resolvable:$false] %s870_s19 }
  0x34   : > { %s872_s23 = scalar_lea.vmem %s871_s19, 256  ;;  %p873_p9 = scmp.lt.s32.totalorder %s1259_s7, %s871_s19 }
  0x35   : > { %p868_p5 = pnand %p866_p3, %p1268_p4  ;;  %p874_p8 = scmp.lt.s32.totalorder %s872_s23, %s865_s14 }
  0x37   : > { %p869_p11 = pneg %p868_p5  ;;  %p875_p7 = por %p874_p8, %p873_p9 }
  0x39   : > { %p876_p10 = pnand %p875_p7, %p869_p11 }
  0x3b   : > { %879 = shalt.err (!%p876_p10)
}
  0x3c   : > { %778 = dma.hbm_to_vmem [thread:$0]  (!%p1244_p0), %s1255_s20, 128, %s1259_s7, %s1262_s8  }
  0x3d   : > { %p1573_p12 = scmp.lt.s32.totalorder %s1120_s26, 3  ;;  %p1574_p1 = scmp.ge.s32.totalorder %s1120_s26, 1 }
  0x3e   : > { %s733_s11 = sshll.u32 %s1236_s13, 2  ;;  %s734_s30 = sshll.u32 %s1116_s25, 6 }
  0x3f   : > { %p1296_p2 = pnand %p1574_p1, %p1573_p12  ;;  %s1305_s19 = scalar_lea.hbm %s1539_s0, %s734_s30 }
  0x40   : > { %s260_s23 = scalar_lea.vmem [#allocation2], %s733_s11  ;;  %s1313_s26 = scalar_lea.hbm %s1541_s2, %s1249_s17 }
  0x41   : > { %s1575_s28 = scalar_select %p1296_p2, 1, 0 }
  0x42   : > { %s267_s1 = sshll.u32 %s260_s23, 4  ;;  %s257_s12 = scalar_lea.sflag [#allocation3], %s1236_s13  ;;  %s1307_s1 = int_to_ptr.vmem [resolvable:$true] %s267_s1 }
  0x43   : > { %s880_s25 = scalar_lea.hbm %s1305_s19, 64  ;;  %s885_s18 = scalar_lea.hbm %s1539_s0, 128 }
  0x44   : > { %p881_p8 = scmp.ne.s32.totalorder %s1305_s19, %s880_s25  ;;  %p886_p6 = scmp.lt.u32.totalorder %s1305_s19, %s1539_s0 }
  0x45   : > { %p887_p13 = scmp.lt.u32.totalorder %s885_s18, %s880_s25  ;;  %p889_p5 = scmp.lt.u32.totalorder %s880_s25, %s1305_s19 }
  0x46   : > { %p883_p9 = pnand %p881_p8, %p1268_p4 }
  0x47   : > { %p888_p3 = por %p887_p13, %p886_p6 }
  0x48   : > { %p884_p11 = pneg %p883_p9 }
  0x49   : > { %p890_p7 = por %p889_p5, %p888_p3 }
  0x4b   : > { %p891_p10 = pnand %p890_p7, %p884_p11 }
  0x4d   : > { %894 = shalt.err (!%p891_p10)
}
  0x4e   : > { %s895_s23 = scalar_lea.vmem %s1307_s1, 64  ;;  %s1123_s20 = smov [#allocation2]  }
  0x4f   : > { %p896_p12 = scmp.ne.s32.totalorder %s1307_s1, %s895_s23  ;;  %s900_s7 = sshll.u32 %s1123_s20, 4  ;;  %s901_s7 = int_to_ptr.vmem [resolvable:$false] %s900_s7 }
  0x50   : > { %s902_s21 = scalar_lea.vmem %s901_s7, 128  ;;  %p903_p9 = scmp.lt.s32.totalorder %s1307_s1, %s901_s7 }
  0x51   : > { %p898_p1 = pnand %p896_p12, %p1268_p4  ;;  %p904_p2 = scmp.lt.s32.totalorder %s902_s21, %s895_s23 }
  0x53   : > { %p899_p8 = pneg %p898_p1  ;;  %p905_p6 = por %p904_p2, %p903_p9 }
  0x55   : > { %p906_p13 = pnand %p905_p6, %p899_p8 }
  0x57   : > { %909 = shalt.err (!%p906_p13)
}
  0x58   : > { %775 = dma.hbm_to_vmem [thread:$0]  (!%p1244_p0), %s1305_s19, 64, %s1307_s1, %s257_s12  }
  0x59   : > { %s298_s25 = scalar_lea.vmem [#allocation7], %s1240_s15  ;;  %s910_s14 = scalar_lea.hbm %s1313_s26, 128 }
  0x5a   : > { %s307_s30 = sshll.u32 %s298_s25, 4  ;;  %p911_p11 = scmp.ne.s32.totalorder %s1313_s26, %s910_s14  ;;  %s308_s30 = int_to_ptr.vmem [resolvable:$true] %s307_s30 }
  0x5b   : > { %s915_s23 = scalar_lea.hbm %s1541_s2, 256  ;;  %p916_p5 = scmp.lt.u32.totalorder %s1313_s26, %s1541_s2 }
  0x5c   : > { %p913_p2 = pnand %p911_p11, %p1268_p4  ;;  %p917_p7 = scmp.lt.u32.totalorder %s915_s23, %s910_s14 }
  0x5d   : > { %p919_p12 = scmp.lt.u32.totalorder %s910_s14, %s1313_s26 }
  0x5e   : > { %p914_p3 = pneg %p913_p2  ;;  %p918_p10 = por %p917_p7, %p916_p5 }
  0x60   : > { %p920_p1 = por %p919_p12, %p918_p10 }
  0x62   : > { %p921_p8 = pnand %p920_p1, %p914_p3 }
  0x64   : > { %924 = shalt.err (!%p921_p8)
}
  0x65   : > { %s925_s1 = scalar_lea.vmem %s308_s30, 128  ;;  %s1124_s12 = smov [#allocation7]  }
  0x66   : > { %p926_p9 = scmp.ne.s32.totalorder %s308_s30, %s925_s1  ;;  %s930_s19 = sshll.u32 %s1124_s12, 4  ;;  %s931_s19 = int_to_ptr.vmem [resolvable:$false] %s930_s19 }
  0x67   : > { %s932_s21 = scalar_lea.vmem %s931_s19, 256  ;;  %p933_p11 = scmp.lt.s32.totalorder %s308_s30, %s931_s19 }
  0x68   : > { %p928_p6 = pnand %p926_p9, %p1268_p4  ;;  %p934_p2 = scmp.lt.s32.totalorder %s932_s21, %s925_s1 }
  0x6a   : > { %p929_p13 = pneg %p928_p6  ;;  %p935_p0 = por %p934_p2, %p933_p11 }
  0x6c   : > { %p936_p5 = pnand %p935_p0, %p929_p13 }
  0x6e   : > { %939 = shalt.err (!%p936_p5)
}
  0x6f   : > { %p1576_p7 = scmp.ne.s32.totalorder %s1570_s16, 0  ;;  %s1360_s18 = scalar_lea.hbm %s1542_s3, %s1249_s17 }
  0x70   : > { %s318_s11 = scalar_lea.vmem [#allocation8], %s1240_s15  ;;  %s315_s20 = scalar_lea.sflag [#allocation9], %s1236_s13 }
  0x71   : > { %781 = dma.hbm_to_vmem [thread:$0]  (!%p1576_p7), %s1313_s26, 128, %s308_s30, %s1262_s8  }
  0x72   : > { %s327_s23 = sshll.u32 %s318_s11, 4  ;;  %s940_s7 = scalar_lea.hbm %s1360_s18, 128  ;;  %s328_s23 = int_to_ptr.vmem [resolvable:$true] %s327_s23 }
  0x73   : > { %p941_p0 = scmp.ne.s32.totalorder %s1360_s18, %s940_s7  ;;  %s945_s8 = scalar_lea.hbm %s1542_s3, 256 }
  0x74   : > { %p946_p12 = scmp.lt.u32.totalorder %s1360_s18, %s1542_s3  ;;  %p947_p1 = scmp.lt.u32.totalorder %s945_s8, %s940_s7 }
  0x75   : > { %p943_p3 = pnand %p941_p0, %p1268_p4  ;;  %p949_p9 = scmp.lt.u32.totalorder %s940_s7, %s1360_s18 }
  0x76   : > { %p948_p8 = por %p947_p1, %p946_p12 }
  0x77   : > { %p944_p10 = pneg %p943_p3 }
  0x78   : > { %p950_p6 = por %p949_p9, %p948_p8 }
  0x7a   : > { %p951_p13 = pnand %p950_p6, %p944_p10 }
  0x7c   : > { %954 = shalt.err (!%p951_p13)
}
  0x7d   : > { %s955_s13 = scalar_lea.vmem %s328_s23, 128  ;;  %s1125_s15 = smov [#allocation8]  }
  0x7e   : > { %p956_p11 = scmp.ne.s32.totalorder %s328_s23, %s955_s13  ;;  %s960_s12 = sshll.u32 %s1125_s15, 4  ;;  %s961_s12 = int_to_ptr.vmem [resolvable:$false] %s960_s12 }
  0x7f   : > { %s962_s19 = scalar_lea.vmem %s961_s12, 256  ;;  %p963_p0 = scmp.lt.s32.totalorder %s328_s23, %s961_s12 }
  0x80   : > { %p958_p2 = pnand %p956_p11, %p1268_p4  ;;  %p964_p3 = scmp.lt.s32.totalorder %s962_s19, %s955_s13 }
  0x82   : > { %p959_p5 = pneg %p958_p2  ;;  %p965_p7 = por %p964_p3, %p963_p0 }
  0x84   : > { %p966_p1 = pnand %p965_p7, %p959_p5 }
  0x86   : > { %969 = shalt.err (!%p966_p1)
}
  0x87   : > { %p1577_p12 = scmp.ne.s32.totalorder %s1570_s16, 0  ;;  %p1578_p10 = scmp.ne.s32.totalorder %s1575_s28, 0 }
  0x88   : > { %s1384_s29 = sand.u32 (!%p1578_p10), 1, %s1104_s22   ;;  %p1579_p4 = scmp.ne.s32.totalorder (!%p1578_p10), %s1565_s9, 0 }
  0x89   : > { %784 = dma.hbm_to_vmem [thread:$0]  (!%p1577_p12), %s1360_s18, 128, %s328_s23, %s315_s20  }
  0x8a   : > { %336 = sbr.rel (%p1578_p10) target bundleno = 242 (0xf2), region = 36  ;;  %s742_s21 = sshll.u32 (!%p1578_p10), %s1384_s29, 2 }
  0x8b   : > { %s339_s25 = scalar_lea.sflag (!%p1578_p10), [#allocation3], %s1384_s29  ;;  %s342_s14 = scalar_lea.vmem (!%p1578_p10), [#allocation2], %s742_s21 }
  0x91   : > { %1079 = dma.done.wait (%p1579_p4), %s339_s25, 64  }
  0x92   : > { %1081 = vsyncadd (%p1579_p4), %s339_s25, 4294967232  ;;  %s347_s16 = sand.u32 1, %s1196_s27   ;;  %s1394_s28 = sshll.u32 %s1384_s29, 3 }
  0x93   : > { %s348_s18 = scalar_lea.sflag [#allocation6], %s347_s16  ;;  %s351_s11 = scalar_lea.vmem [#allocation5], %s1394_s28 }
  0x94   : > { %1083 = dma.done.wait (%p1579_p4), %s348_s18, 256  }
  0x95   : > { %1085 = vsyncadd (%p1579_p4), %s348_s18, 4294967040  ;;  %s360_s23 = scalar_lea.vmem [#allocation7], %s1394_s28  ;;  %s366_s20 = scalar_lea.sflag [#allocation9], %s1384_s29 }
  0x96   : > { %s369_s7 = scalar_lea.vmem [#allocation8], %s1394_s28 }
  0x97   : > { %1087 = dma.done.wait (%p1579_p4), %s366_s20, 128  }
  0x98   : > { %1089 = vsyncadd (%p1579_p4), %s366_s20, 4294967168  ;;  %v429_v0 = vlaneseq  ;;  %v423_v3 = vld [vmem:[%s342_s14] sm:$0x7]  ;;  %v426_v5 = vld [vmem:[%s369_s7] sm:$0xff]  ;;  %s415_s1 = scalar_lea.vmem [#allocation11], %s1394_s28  ;;  %s1412_s8 = sshll.u32 %s1112_s24, 7 }
  0x99   : > { %v425_v4 = vld [vmem:[%s360_s23] sm:$0xff]  ;;  %v427_v6 = vsub.f32 1.0, %v426_v5  ;;  %s497_s26 = sshll.u32 %s415_s1, 4  ;;  %v424_v10 = vld [vmem:[%s351_s11] sm:$0xff]  ;;  %s1420_s17 = scalar_lea.hbm %s1544_s5, %s1412_s8  ;;  %s1414_s26 = int_to_ptr.vmem [resolvable:$true] %s497_s26 }
  0x9a   : > { %v430_v1 = vshrl.u32 %v429_v0, 7  ;;  %s1424_s13 = scalar_lea.sflag [#allocation12], %s347_s16  ;;  %s970_s24 = scalar_lea.vmem %s1414_s26, 128 }
  0x9b   : > { %v428_v9 = vmul.f32 %v427_v6, %v425_v4  ;;  %p971_p7 = scmp.ne.s32.totalorder %s1414_s26, %s970_s24  ;;  %p1580_p8 = scmp.ne.s32.totalorder %s1566_s10, 0 }
  0x9c   : > { %v431_v2 = vsub.s32 2, %v430_v1  ;;  %v437_v8 = vsub.s32 1, %v430_v1  ;;  %s1126_s15 = smov [#allocation11]  }
  0x9d   : > { %p972_p9 = pnand %p971_p7, %p1580_p8  ;;  %s974_s12 = sshll.u32 %s1126_s15, 4  ;;  %s975_s12 = int_to_ptr.vmem [resolvable:$false] %s974_s12 }
  0x9e   : > { %v432_v7 = vrot.slane %v423_v3, %v431_v2  ;;  %v438_v12 = vrot.slane %v423_v3, %v437_v8  ;;  %s976_s19 = scalar_lea.vmem %s975_s12, 256  ;;  %p977_p13 = scmp.lt.s32.totalorder %s1414_s26, %s975_s12 }
  0x9f   : > { %p973_p6 = pneg %p972_p9  ;;  %p978_p11 = scmp.lt.s32.totalorder %s976_s19, %s970_s24 }
  0xa0   : > { %v433_v11 = vmul.f32 %v432_v7, %v428_v9 }
  0xa1   : > { %p979_p2 = por %p978_p11, %p977_p13 }
  0xa2   : > { %v434_v13 = vadd.f32 %v433_v11, %v424_v10 }
  0xa3   : > { %p980_p5 = pnand %p979_p2, %p973_p6 }
  0xa4   : > { %v439_v14 = vadd.f32 %v438_v12, %v434_v13  ;;  %454 = vst [vmem:[%s415_s1] sm:$0xff] %v434_v13 }
  0xa5   : > { %983 = shalt.err (!%p980_p5)
}
  0xa6   : > { %s984_s27 = scalar_lea.hbm %s1420_s17, 128  ;;  %s988_s14 = scalar_lea.hbm %s1544_s5, 256 }
  0xa7   : > { %p985_p0 = scmp.ne.s32.totalorder %s1420_s17, %s984_s27  ;;  %p989_p12 = scmp.lt.u32.totalorder %s1420_s17, %s1544_s5 }
  0xa8   : > { %p990_p10 = scmp.lt.u32.totalorder %s988_s14, %s984_s27  ;;  %p992_p7 = scmp.lt.u32.totalorder %s984_s27, %s1420_s17 }
  0xa9   : > { %p986_p3 = pnand %p985_p0, %p1580_p8 }
  0xaa   : > { %p991_p4 = por %p990_p10, %p989_p12 }
  0xab   : > { %p987_p1 = pneg %p986_p3 }
  0xac   : > { %p993_p9 = por %p992_p7, %p991_p4 }
  0xae   : > { %p994_p6 = pnand %p993_p9, %p987_p1 }
  0xb0   : > { %997 = shalt.err (!%p994_p6)
}
  0xb1   : > { %767 = dma.vmem_to_hbm [thread:$0]  (%p1580_p8), %s1414_s26, 128, %s1420_s17, %s1424_s13   ;;  %v749_v15 = vmul.f32 -1.442695, %v439_v14  ;;  %v450_v18 = vsub.s32 0, %v430_v1  ;;  %v1127_v21 = vmov 0.0  }
  0xb2   : > { %s422_s11 = scalar_lea.vmem [#allocation13], %s1394_s28  ;;  %s408_s20 = scalar_lea.vmem [#allocation10], %s1394_s28 }
  0xb3   : > { %846 = vpow2.f32 %v749_v15  ;;  %s512_s23 = sshll.u32 %s422_s11, 4  ;;  %v451_v19 = vrot.slane %v423_v3, %v450_v18  ;;  %s482_s7 = sshll.u32 %s408_s20, 4  ;;  %s1452_s23 = int_to_ptr.vmem [resolvable:$true] %s512_s23  ;;  %s1460_s7 = int_to_ptr.vmem [resolvable:$true] %s482_s7 }
  0xb4   : > { %s1458_s9 = scalar_lea.hbm %s1545_s6, %s1412_s8  ;;  %s1466_s24 = scalar_lea.hbm %s1543_s4, %s1412_s8 }
  0xb5   : > { %s998_s15 = scalar_lea.vmem %s1452_s23, 128  ;;  %s1128_s12 = smov [#allocation13]  }
  0xb6   : > { %p999_p13 = scmp.ne.s32.totalorder %s1452_s23, %s998_s15  ;;  %s1002_s19 = sshll.u32 %s1128_s12, 4  ;;  %s1003_s19 = int_to_ptr.vmem [resolvable:$false] %s1002_s19 }
  0xb7   : > { %s1004_s27 = scalar_lea.vmem %s1003_s19, 256  ;;  %p1005_p5 = scmp.lt.s32.totalorder %s1452_s23, %s1003_s19 }
  0xb8   : > { %p1000_p11 = pnand %p999_p13, %p1580_p8  ;;  %p1006_p0 = scmp.lt.s32.totalorder %s1004_s27, %s998_s15 }
  0xba   : > { %p1001_p2 = pneg %p1000_p11  ;;  %p1007_p3 = por %p1006_p0, %p1005_p5 }
  0xbc   : > { %p1008_p1 = pnand %p1007_p3, %p1001_p2 }
  0xbd   : > { %v847_v16 = vpop.eup %846 }
  0xbe   : > { %v443_v17 = vadd.f32 1.0, %v847_v16 }
  0xc0   : > { %848 = vrcp.f32 %v443_v17 }
  0xca   : > { %v849_v20 = vpop.eup %848 }
  0xcb   : > { %vm446_vm0 = vcmp.gt.f32.partialorder %v849_v20, 0.5 }
  0xcc   : > { %v447_v22 = vsel %vm446_vm0, 1.0, %v1127_v21 }
  0xcd   : > { %v452_v23 = vmul.f32 %v451_v19, %v447_v22  ;;  %455 = vst [vmem:[%s422_s11] sm:$0xff] %v447_v22 }
  0xce   : > { %1011 = shalt.err (!%p1008_p1)
}
  0xcf   : > { %s1012_s8 = scalar_lea.hbm %s1458_s9, 128  ;;  %s1016_s14 = scalar_lea.hbm %s1545_s6, 256 }
  0xd0   : > { %p1013_p12 = scmp.ne.s32.totalorder %s1458_s9, %s1012_s8  ;;  %p1017_p7 = scmp.lt.u32.totalorder %s1458_s9, %s1545_s6 }
  0xd1   : > { %p1018_p9 = scmp.lt.u32.totalorder %s1016_s14, %s1012_s8  ;;  %p1020_p13 = scmp.lt.u32.totalorder %s1012_s8, %s1458_s9 }
  0xd2   : > { %p1014_p10 = pnand %p1013_p12, %p1580_p8 }
  0xd3   : > { %p1019_p6 = por %p1018_p9, %p1017_p7 }
  0xd4   : > { %p1015_p4 = pneg %p1014_p10 }
  0xd5   : > { %p1021_p11 = por %p1020_p13, %p1019_p6 }
  0xd7   : > { %p1022_p2 = pnand %p1021_p11, %p1015_p4 }
  0xd9   : > { %1025 = shalt.err (!%p1022_p2)
}
  0xda   : > { %768 = dma.vmem_to_hbm [thread:$0]  (%p1580_p8), %s1452_s23, 128, %s1458_s9, %s1424_s13   ;;  %453 = vst [vmem:[%s408_s20] sm:$0xff] %v452_v23 }
  0xdb   : > { %s457_s11 = scalar_lea.sflag [#allocation4], %s1384_s29  ;;  %s1026_s1 = scalar_lea.vmem %s1460_s7, 128 }
  0xdc   : > { %p1027_p5 = scmp.ne.s32.totalorder %s1460_s7, %s1026_s1  ;;  %s1129_s26 = smov [#allocation10]  }
  0xdd   : > { %s1030_s30 = sshll.u32 %s1129_s26, 4  ;;  %s1031_s30 = int_to_ptr.vmem [resolvable:$false] %s1030_s30 }
  0xde   : > { %p1028_p0 = pnand %p1027_p5, %p1580_p8  ;;  %s1032_s17 = scalar_lea.vmem %s1031_s30, 256 }
  0xdf   : > { %p1033_p1 = scmp.lt.s32.totalorder %s1460_s7, %s1031_s30  ;;  %p1034_p12 = scmp.lt.s32.totalorder %s1032_s17, %s1026_s1 }
  0xe0   : > { %p1029_p3 = pneg %p1028_p0 }
  0xe1   : > { %p1035_p10 = por %p1034_p12, %p1033_p1 }
  0xe3   : > { %p1036_p4 = pnand %p1035_p10, %p1029_p3 }
  0xe5   : > { %1039 = shalt.err (!%p1036_p4)
}
  0xe6   : > { %s1040_s29 = scalar_lea.hbm %s1466_s24, 128  ;;  %s1044_s23 = scalar_lea.hbm %s1543_s4, 256 }
  0xe7   : > { %p1041_p7 = scmp.ne.s32.totalorder %s1466_s24, %s1040_s29  ;;  %p1045_p13 = scmp.lt.u32.totalorder %s1466_s24, %s1543_s4 }
  0xe8   : > { %p1046_p11 = scmp.lt.u32.totalorder %s1044_s23, %s1040_s29  ;;  %p1048_p5 = scmp.lt.u32.totalorder %s1040_s29, %s1466_s24 }
  0xe9   : > { %p1042_p9 = pnand %p1041_p7, %p1580_p8 }
  0xea   : > { %p1047_p2 = por %p1046_p11, %p1045_p13 }
  0xeb   : > { %p1043_p6 = pneg %p1042_p9 }
  0xec   : > { %p1049_p0 = por %p1048_p5, %p1047_p2 }
  0xee   : > { %p1050_p3 = pnand %p1049_p0, %p1043_p6 }
  0xf0   : > { %1053 = shalt.err (!%p1050_p3)
}
  0xf1   : > { %766 = dma.vmem_to_hbm [thread:$0]  (%p1580_p8), %s1460_s7, 128, %s1466_s24, %s457_s11  }
  0xf2 PF: > { %s1581_s15 = sld [smem:[#allocation19_spill]]  ;;  %s1582_s12 = sld [smem:[#allocation25_spill]] }
  0xf3   : > { %s1583_s19 = sld [smem:[#allocation22_spill]] }
  0xf8   : > { %s524_s27 = sand.u32 1, %s1581_s15   ;;  %p1584_p1 = scmp.ne.s32.totalorder %s1582_s12, 0 }
  0xf9   : > { %p1585_p12 = scmp.ge.s32.totalorder %s1583_s19, 2  ;;  %s525_s8 = scalar_lea.sflag [#allocation4], %s524_s27 }
  0xfb   : > { %p786_p10 = pnand %p1585_p12, %p1584_p1 }
  0xfd   : > { %1091 = dma.done.wait (!%p786_p10), %s525_s8, 128  }
  0xfe   : > { %1093 = vsyncadd (!%p786_p10), %s525_s8, 4294967168  ;;  %s1586_s21 = sadd.s32 4294967294, %s1583_s19  }
  0xff   : > { %s533_s25 = sand.u32 1, %s1586_s21  }
 0x100   : > { %s534_s14 = scalar_lea.sflag [#allocation12], %s533_s25 }
 0x101   : > { %1095 = dma.done.wait (!%p786_p10), %s534_s14, 256  }
 0x102   : > { %1097 = vsyncadd (!%p786_p10), %s534_s14, 4294967040  ;;  %s32_s26 = sadd.s32 1, %s1583_s19   ;;  %s1587_s10 = sld [smem:[#allocation20_spill]] }
 0x103   : > { %p29_p8 = scmp.ge.s32.totalorder %s32_s26, 4   ;;  %s1588_s23 = sld [smem:[#allocation24_spill]] }
 0x104   : > { %s1589_s24 = sld [smem:[#allocation21_spill]]  ;;  %s1590_s25 = sld [smem:[#allocation23_spill]] }
 0x105   : > { %s1591_s21 = smov %s1104_s22  ;;  %31 = sbr.rel (!%p29_p8) target bundleno = 14 (0xe), region = 150 }
 0x108   : > { %s1592_s22 = smov %s1587_s10 }
 0x10c   :  { %548 = vsyncpa [#allocation3], 1 }
 0x10d   :  { %550 = vsyncpa [#allocation3 + $0x1], 1 }
 0x10e   :  { %551 = vsyncpa [#allocation6], 1 }
 0x10f   :  { %553 = vsyncpa [#allocation6 + $0x1], 1 }
 0x110   :  { %554 = vsyncpa [#allocation9], 1 }
 0x111   :  { %556 = vsyncpa [#allocation9 + $0x1], 1 }
 0x112   :  { %557 = vsyncpa [#allocation4], 1 }
 0x113   :  { %559 = vsyncpa [#allocation4 + $0x1], 1 }
 0x114   :  { %560 = vsyncpa [#allocation12], 1 }
 0x115   :  { %562 = vsyncpa [#allocation12 + $0x1], 1 }

</bundles_post_ra>
